<compile_context>
chip_gen: v6e
topology: v6e:2x2x1
jax: 0.10.0
libtpu: 0.0.40
codegen_flags: <defaults>
</compile_context>

<pallas_src>
import jax
import jax.numpy as jnp
from jax.experimental import pallas as pl
from jax.experimental.pallas import tpu as pltpu

_LANE = 128  # lane width of a vreg row; pad the loss vector to a lane-dense row


def _make_softadapt_kernel(num_losses: int, eps: float):
    def kernel(step_ref, losses_ref, prev_ref, loss_ref, lmbda_ref, new_prev_ref):
        step = step_ref[0]
        losses = losses_ref[...]          # (1, L) f32, zero-padded past num_losses
        prev = prev_ref[...]              # (1, L) f32

        lane = jax.lax.broadcasted_iota(jnp.int32, losses.shape, 1)
        valid = lane < num_losses

        # prev_losses[i] = losses[i] in both branches; lane-dense unmasked store,
        # aliased in place onto the prev input buffer at the XLA level.
        new_prev_ref[...] = losses

        @pl.when(step == 0)
        def _():
            # loss = sum_i losses[i]; lmbda = ones
            loss_ref[...] = jnp.sum(jnp.where(valid, losses, 0.0), keepdims=True)
            lmbda_ref[...] = jnp.ones_like(losses)

        @pl.when(step != 0)
        def _():
            # normalizer = max_i(losses[i] / prev_losses[i])  (no eps — torch parity;
            # assumes prev_losses was populated by a step==0 call, as in the original)
            safe_prev = jnp.where(valid, prev, 1.0)
            ratio = jnp.where(valid, losses / safe_prev, -jnp.inf)
            normalizer = jnp.max(ratio)

            # lmbda[i] = exp(losses[i] / (prev_losses[i] + eps) - normalizer)
            inv_prev_eps = pl.reciprocal(prev + eps, approx=False)
            expo = jnp.where(valid, losses * inv_prev_eps - normalizer, -jnp.inf)
            lmbda = jnp.exp(expo)                          # exactly 0 in padded lanes

            lmbda_sum = jnp.sum(lmbda)
            weighted = jnp.sum(lmbda * losses, keepdims=True)          # (1, 1)
            # loss = (sum_i lmbda[i]*losses[i]) * num_losses / (lmbda_sum + eps)
            loss_ref[...] = weighted * (jnp.float32(num_losses) / (lmbda_sum + eps))
            lmbda_ref[...] = lmbda

    return kernel


def _make_step_fn(num_losses: int, eps: float, lanes: int):
    kernel = _make_softadapt_kernel(num_losses, eps)

    def step_fn(step, prev_padded, loss_vals, weights=None):
        # weights: static tuple of python floats (or None) -> weighting is traced too
        vals = [jnp.asarray(v, jnp.float32).reshape(()) for v in loss_vals]
        if weights is not None:
            vals = [jnp.float32(w) * v for w, v in zip(weights, vals)]
        losses_vec = jnp.stack(vals)                                        # (n,)
        losses_padded = (jnp.zeros((1, lanes), jnp.float32)
                         .at[0, :num_losses].set(losses_vec))
        step_arr = jnp.asarray(step, jnp.int32).reshape(1)

        loss, lmbda, new_prev = pl.pallas_call(
            kernel,
            out_shape=(
                jax.ShapeDtypeStruct((1, 1), jnp.float32),        # aggregated loss
                jax.ShapeDtypeStruct((1, lanes), jnp.float32),    # lmbda (lane-dense)
                jax.ShapeDtypeStruct((1, lanes), jnp.float32),    # new prev (aliased)
            ),
            in_specs=[
                pl.BlockSpec(memory_space=pltpu.MemorySpace.SMEM),  # step scalar
                pl.BlockSpec(memory_space=pltpu.MemorySpace.VMEM),  # losses (1, L)
                pl.BlockSpec(memory_space=pltpu.MemorySpace.VMEM),  # prev   (1, L)
            ],
            out_specs=(
                pl.BlockSpec(memory_space=pltpu.MemorySpace.VMEM),
                pl.BlockSpec(memory_space=pltpu.MemorySpace.VMEM),
                pl.BlockSpec(memory_space=pltpu.MemorySpace.VMEM),
            ),
            # prev input (tensor arg index 2) -> new_prev output (output index 2)
            input_output_aliases={2: 2},
        )(step_arr, losses_padded, prev_padded)

        return loss[0, 0], lmbda[0, :num_losses], new_prev

    # Donate the prev buffer so the in-place update carries across steps.
    return jax.jit(step_fn, static_argnames=("weights",), donate_argnums=(1,))


class SoftAdaptJAX:
    """JAX/Pallas port of neuralop SoftAdapt. Holds prev_losses as host-side state."""

    def __init__(self, params, num_losses, eps=1e-8, weights=None):
        self.params = list(params)          # unused in forward (kept for parity)
        self.num_losses = int(num_losses)
        self.eps = float(eps)
        self.weights = weights              # Optional[Dict[str, float]]
        self._lanes = max(_LANE, ((self.num_losses + _LANE - 1) // _LANE) * _LANE)
        # register_buffer('prev_losses', zeros) equivalent; stored lane-padded.
        self._prev_padded = jnp.zeros((1, self._lanes), dtype=jnp.float32)
        self._step_fn = _make_step_fn(self.num_losses, self.eps, self._lanes)

    @property
    def prev_losses(self):
        return self._prev_padded[0, :self.num_losses]

    def forward(self, losses, step):
        keys = list(losses.keys())
        assert len(keys) == self.num_losses
        if self.weights is not None:
            wtuple = tuple(float(self.weights.get(k, 1.0)) for k in keys)
        else:
            wtuple = None
        loss_vals = tuple(losses[k] for k in keys)
        loss, lmbda, new_prev = self._step_fn(
            step, self._prev_padded, loss_vals, weights=wtuple)
        self._prev_padded = new_prev        # buffer update (register_buffer semantics)
        return loss, lmbda


def _reference(losses_vec, prev, step, num_losses, eps):
    """Pure-JAX reference mirroring the torch code, for sanity check."""
    if step == 0:
        return jnp.sum(losses_vec), jnp.ones_like(losses_vec), losses_vec
    normalizer = jnp.max(losses_vec / prev)
    lmbda = jnp.exp(losses_vec / (prev + eps) - normalizer)
    lmbda_sum = jnp.sum(lmbda)
    loss = jnp.sum(lmbda * losses_vec) * num_losses / (lmbda_sum + eps)
    return loss, lmbda, losses_vec


if __name__ == "__main__":
    key = jax.random.PRNGKey(0)
    num_losses = 4

    # Deterministic dummy params (unused in forward, only needed by __init__ parity).
    k_p, k0, k1 = jax.random.split(key, 3)
    params = [jax.random.normal(k_p, (8, 8), dtype=jnp.float32)]

    agg = SoftAdaptJAX(params, num_losses=num_losses, eps=1e-8, weights=None)

    # Step 0: positive scalar losses
    vals0 = jnp.abs(jax.random.normal(k0, (num_losses,), dtype=jnp.float32)) + 0.1
    losses0 = {f"loss_{i}": vals0[i] for i in range(num_losses)}
    loss0, lmbda0 = agg.forward(losses0, step=0)
    jax.block_until_ready((loss0, lmbda0))

    ref_loss0, ref_lmbda0, _ = _reference(vals0, jnp.zeros(num_losses), 0,
                                          num_losses, 1e-8)
    assert jnp.allclose(loss0, ref_loss0, rtol=1e-5, atol=1e-6)
    assert jnp.allclose(lmbda0, ref_lmbda0, rtol=1e-5, atol=1e-6)
    assert jnp.allclose(agg.prev_losses, vals0, rtol=1e-6, atol=1e-7)

    # Step 1: different positive scalar losses, exercises the softadapt branch
    prev_snapshot = agg.prev_losses            # independent sliced copy (safe w/ donation)
    vals1 = jnp.abs(jax.random.normal(k1, (num_losses,), dtype=jnp.float32)) + 0.1
    losses1 = {f"loss_{i}": vals1[i] for i in range(num_losses)}
    loss1, lmbda1 = agg.forward(losses1, step=1)
    jax.block_until_ready((loss1, lmbda1))

    ref_loss1, ref_lmbda1, _ = _reference(vals1, prev_snapshot, 1, num_losses, 1e-8)
    assert jnp.allclose(loss1, ref_loss1, rtol=1e-5, atol=1e-6)
    assert jnp.allclose(lmbda1, ref_lmbda1, rtol=1e-5, atol=1e-6)
    assert jnp.allclose(agg.prev_losses, vals1, rtol=1e-6, atol=1e-7)

    print("KERNEL_OK")
</pallas_src>

<mosaic_0001>
module attributes {stable_mosaic.version = 11 : i64} {
  func.func @kernel(%arg0: memref<1xi32, #tpu.memory_space<smem>>, %arg1: memref<1x128xf32, #tpu.memory_space<vmem>>, %arg2: memref<1x128xf32, #tpu.memory_space<vmem>>, %arg3: memref<1x1xf32, #tpu.memory_space<vmem>>, %arg4: memref<1x128xf32, #tpu.memory_space<vmem>>, %arg5: memref<1x128xf32, #tpu.memory_space<vmem>>) attributes {dimension_semantics = [], scalar_prefetch = 0 : i64, scratch_operands = 0 : i64, tpu.core_type = #tpu.core_type<tc>} {
    %c0 = arith.constant 0 : index
    %0 = memref.load %arg0[%c0] : memref<1xi32, #tpu.memory_space<smem>>
    %c0_0 = arith.constant 0 : index
    %c0_1 = arith.constant 0 : index
    %1 = vector.load %arg1[%c0_0, %c0_1] : memref<1x128xf32, #tpu.memory_space<vmem>>, vector<1x128xf32>
    %c0_2 = arith.constant 0 : index
    %c0_3 = arith.constant 0 : index
    %2 = vector.load %arg2[%c0_2, %c0_3] : memref<1x128xf32, #tpu.memory_space<vmem>>, vector<1x128xf32>
    %3 = tpu.iota {dimensions = array<i32: 1>} : vector<1x128xi32>
    %c4_i32 = arith.constant 4 : i32
    %4 = vector.broadcast %c4_i32 : i32 to vector<1x128xi32>
    %5 = arith.cmpi slt, %3, %4 : vector<1x128xi32>
    %c0_4 = arith.constant 0 : index
    %c0_5 = arith.constant 0 : index
    %6 = vector.load %arg5[%c0_4, %c0_5] : memref<1x128xf32, #tpu.memory_space<vmem>>, vector<1x128xf32>
    tpu.vector_store %arg5[%c0_4, %c0_5], %1 {strides = array<i32>} : memref<1x128xf32, #tpu.memory_space<vmem>>, vector<1x128xf32>,
    %c0_i32 = arith.constant 0 : i32
    %7 = arith.cmpi eq, %0, %c0_i32 : i32
    %8 = arith.extui %7 : i1 to i32
    %c0_i32_6 = arith.constant 0 : i32
    %9 = arith.cmpi ne, %8, %c0_i32_6 : i32
    scf.if %9 {
      %cst = arith.constant 0.000000e+00 : f32
      %13 = vector.broadcast %cst : f32 to vector<1x128xf32>
      %14 = arith.select %5, %1, %13 : vector<1x128xi1>, vector<1x128xf32>
      %15 = vector.shape_cast %14 : vector<1x128xf32> to vector<1x1x128xf32>
      %cst_9 = arith.constant dense<0.000000e+00> : vector<1xf32>
      %16 = vector.multi_reduction <add>, %15, %cst_9 [1, 2] : vector<1x1x128xf32> to vector<1xf32>
      %17 = vector.shape_cast %16 : vector<1xf32> to vector<1x1x1xf32>
      %18 = vector.extract %17[0, 0, 0] : f32 from vector<1x1x1xf32>
      %19 = vector.broadcast %18 : f32 to vector<1x1xf32>
      %c0_10 = arith.constant 0 : index
      %c0_11 = arith.constant 0 : index
      %20 = vector.load %arg3[%c0_10, %c0_11] : memref<1x1xf32, #tpu.memory_space<vmem>>, vector<1x1xf32>
      tpu.vector_store %arg3[%c0_10, %c0_11], %19 {strides = array<i32>} : memref<1x1xf32, #tpu.memory_space<vmem>>, vector<1x1xf32>,
      %cst_12 = arith.constant 1.000000e+00 : f32
      %21 = vector.broadcast %cst_12 : f32 to vector<1x128xf32>
      %c0_13 = arith.constant 0 : index
      %c0_14 = arith.constant 0 : index
      %22 = vector.load %arg4[%c0_13, %c0_14] : memref<1x128xf32, #tpu.memory_space<vmem>>, vector<1x128xf32>
      tpu.vector_store %arg4[%c0_13, %c0_14], %21 {strides = array<i32>} : memref<1x128xf32, #tpu.memory_space<vmem>>, vector<1x128xf32>,
    } else {
    }
    %c0_i32_7 = arith.constant 0 : i32
    %10 = arith.cmpi ne, %0, %c0_i32_7 : i32
    %11 = arith.extui %10 : i1 to i32
    %c0_i32_8 = arith.constant 0 : i32
    %12 = arith.cmpi ne, %11, %c0_i32_8 : i32
    scf.if %12 {
      %cst = arith.constant 1.000000e+00 : f32
      %13 = vector.broadcast %cst : f32 to vector<1x128xf32>
      %14 = arith.select %5, %2, %13 : vector<1x128xi1>, vector<1x128xf32>
      %15 = arith.divf %1, %14 : vector<1x128xf32>
      %cst_9 = arith.constant 0xFF800000 : f32
      %16 = vector.broadcast %cst_9 : f32 to vector<1x128xf32>
      %17 = arith.select %5, %15, %16 : vector<1x128xi1>, vector<1x128xf32>
      %18 = vector.shape_cast %17 : vector<1x128xf32> to vector<1x1x128xf32>
      %cst_10 = arith.constant dense<0xFF800000> : vector<1xf32>
      %19 = vector.multi_reduction <maximumf>, %18, %cst_10 [1, 2] : vector<1x1x128xf32> to vector<1xf32>
      %20 = vector.shape_cast %19 : vector<1xf32> to vector<1x1x1xf32>
      %21 = vector.extract %20[0, 0, 0] : f32 from vector<1x1x1xf32>
      %cst_11 = arith.constant 9.99999993E-9 : f32
      %22 = vector.broadcast %cst_11 : f32 to vector<1x128xf32>
      %23 = arith.addf %2, %22 : vector<1x128xf32>
      %24 = tpu.reciprocal %23 : vector<1x128xf32> -> vector<1x128xf32>
      %25 = arith.mulf %1, %24 : vector<1x128xf32>
      %26 = vector.broadcast %21 : f32 to vector<1x128xf32>
      %27 = arith.subf %25, %26 : vector<1x128xf32>
      %cst_12 = arith.constant 0xFF800000 : f32
      %28 = vector.broadcast %cst_12 : f32 to vector<1x128xf32>
      %29 = arith.select %5, %27, %28 : vector<1x128xi1>, vector<1x128xf32>
      %30 = math.exp %29 : vector<1x128xf32>
      %31 = vector.shape_cast %30 : vector<1x128xf32> to vector<1x1x128xf32>
      %cst_13 = arith.constant dense<0.000000e+00> : vector<1xf32>
      %32 = vector.multi_reduction <add>, %31, %cst_13 [1, 2] : vector<1x1x128xf32> to vector<1xf32>
      %33 = vector.shape_cast %32 : vector<1xf32> to vector<1x1x1xf32>
      %34 = vector.extract %33[0, 0, 0] : f32 from vector<1x1x1xf32>
      %35 = arith.mulf %30, %1 : vector<1x128xf32>
      %36 = vector.shape_cast %35 : vector<1x128xf32> to vector<1x1x128xf32>
      %cst_14 = arith.constant dense<0.000000e+00> : vector<1xf32>
      %37 = vector.multi_reduction <add>, %36, %cst_14 [1, 2] : vector<1x1x128xf32> to vector<1xf32>
      %38 = vector.shape_cast %37 : vector<1xf32> to vector<1x1x1xf32>
      %39 = vector.extract %38[0, 0, 0] : f32 from vector<1x1x1xf32>
      %40 = vector.broadcast %39 : f32 to vector<1x1xf32>
      %cst_15 = arith.constant 9.99999993E-9 : f32
      %41 = arith.addf %34, %cst_15 : f32
      %cst_16 = arith.constant 4.000000e+00 : f32
      %42 = arith.divf %cst_16, %41 : f32
      %43 = vector.broadcast %42 : f32 to vector<1x1xf32>
      %44 = arith.mulf %40, %43 : vector<1x1xf32>
      %c0_17 = arith.constant 0 : index
      %c0_18 = arith.constant 0 : index
      %45 = vector.load %arg3[%c0_17, %c0_18] : memref<1x1xf32, #tpu.memory_space<vmem>>, vector<1x1xf32>
      tpu.vector_store %arg3[%c0_17, %c0_18], %44 {strides = array<i32>} : memref<1x1xf32, #tpu.memory_space<vmem>>, vector<1x1xf32>,
      %c0_19 = arith.constant 0 : index
      %c0_20 = arith.constant 0 : index
      %46 = vector.load %arg4[%c0_19, %c0_20] : memref<1x128xf32, #tpu.memory_space<vmem>>, vector<1x128xf32>
      tpu.vector_store %arg4[%c0_19, %c0_20], %30 {strides = array<i32>} : memref<1x128xf32, #tpu.memory_space<vmem>>, vector<1x128xf32>,
    } else {
    }
    return
  }
}

</mosaic_0001>

<bundles_post_ra>
// kernel: step_fn.1
= control target key start
LH: loop header
LB: loop body
LE: loop exit
PB: predicated region body
PF: predicated region fallthrough
CT: control target
= control target key end

     0   :  { %12 = vsyncpa [#allocation4], 0  ;;  %v22_v2 = vlaneseq  ;;  %s234_s0 = inlined_call_operand.<no memory space> [shape: s32[1], index: 0, kind: input, shape index: {}]   ;;  %s235_s1 = inlined_call_operand.vmem [shape: f32[1,128], index: 1, kind: input, shape index: {}]   ;;  %s236_s2 = inlined_call_operand.vmem [shape: f32[1,128], index: 2, kind: input, shape index: {}, may-alias: {2,5}]   ;;  %s237_s3 = inlined_call_operand.hbm [shape: f32[1,1], index: 3, kind: output, shape index: {0}]   ;;  %s238_s4 = inlined_call_operand.vmem [shape: f32[1,128], index: 4, kind: output, shape index: {1}]   ;;  %s239_s5 = inlined_call_operand.vmem [shape: f32[1,128], index: 5, kind: output, shape index: {2}, may-alias: {2,5}]  }
   0x1   :  { %v20_v0 = vld [vmem:[%s235_s1] sm:$0x1]  ;;  %p127_p0 = scmp.ne.s32.totalorder %s234_s0, 0 }
   0x2   :  { %v21_v1 = vld [vmem:[%s236_s2] sm:$0x1]  ;;  %v23_v3 = vand.u32 127, %v22_v2 }
   0x3   :  { %25 = vst [vmem:[%s239_s5] sm:$0x1] %v20_v0  ;;  %29 = sbr.rel (%p127_p0) target bundleno = 212 (0xd4), region = 17 }
   0x4   :  { %vm24_vm0 = vcmp.lt.s32.totalorder %v23_v3, 4 }
   0x8   :  { %v30_v4 = vsel %vm24_vm0, %v20_v0, 0.0  ;;  %vm31_vm1 = vcmask 1040384   ;;  %v171_v6 = vmov 1.0   ;;  %vm43_vm2 = vcmask 0  }
   0x9   :  { %v32_v5 = vsel %vm31_vm1, %v30_v4, 0.0  ;;  %45 = vst [vmem:[%s238_s4] sm:$0x1] %v171_v6 }
   0xa   :  { %33 = vadd.xlane.f32.xlu0 %v32_v5 }
  0x93   :  { %v34_v7 = vpop.xlane.xlu0 %33 }
  0x94   :  { %v35_v8 = vrot.slane %v34_v7, 4 }
  0x96   :  { %v36_v9 = vadd.f32 %v35_v8, %v34_v7 }
  0x98   :  { %v37_v10 = vrot.slane %v36_v9, 2 }
  0x9a   :  { %v38_v11 = vadd.f32 %v37_v10, %v36_v9 }
  0x9c   :  { %v39_v12 = vrot.slane %v38_v11, 1 }
  0x9e   :  { %v40_v13 = vadd.f32 %v39_v12, %v38_v11 }
  0xa0   :  { %129 = vpush %v40_v13 }
  0xd1   :  { %s130_s5 = spop %129 }
  0xd2   :  { %v42_v14 = vstv %s130_s5 }
  0xd3   :  { %44 = vst.msk [vmem:[#allocation3] sm:$0x1] %vm43_vm2, %v42_v14 }
  0xd4 PF:  { %p128_p1 = scmp.eq.s32.totalorder %s234_s0, 0 }
  0xd6   :  { %49 = sbr.rel (%p128_p1) target bundleno = 732 (0x2dc), region = 21 }
  0xdb   :  { %v50_v15 = vsel %vm24_vm0, %v21_v1, 1.0  ;;  %vm54_vm3 = vcmask 1040384   ;;  %v65_v27 = vadd.f32 1e-08, %v21_v1  ;;  %vm102_vm4 = vcmask 0  }
  0xdc   :  { %141 = vrcp.f32 %v50_v15 }
  0xdd   :  { %143 = vrcp.f32 %v65_v27 }
  0xe9   :  { %v142_v16 = vpop.eup %141 }
  0xea   :  { %v52_v17 = vmul.f32 %v142_v16, %v20_v0  ;;  %v144_v28 = vpop.eup %143 }
  0xeb   :  { %v67_v29 = vmul.f32 %v144_v28, %v20_v0 }
  0xec   :  { %v53_v18 = vsel %vm24_vm0, %v52_v17, -inf }
  0xed   :  { %v55_v19 = vsel %vm54_vm3, %v53_v18, -inf }
  0xee   :  { %56 = vmax.xlane.f32.xlu0 %v55_v19 }
 0x177   :  { %v57_v20 = vpop.xlane.xlu0 %56 }
 0x178   :  { %v58_v21 = vrot.slane %v57_v20, 4 }
 0x17a   :  { %v59_v22 = vmax.f32 %v57_v20, %v58_v21 }
 0x17c   :  { %v60_v23 = vrot.slane %v59_v22, 2 }
 0x17e   :  { %v61_v24 = vmax.f32 %v59_v22, %v60_v23 }
 0x180   :  { %v62_v25 = vrot.slane %v61_v24, 1 }
 0x182   :  { %v63_v26 = vmax.f32 %v61_v24, %v62_v25 }
 0x184   :  { %131 = vpush %v63_v26 }
 0x1b5   :  { %s132_s0 = spop %131 }
 0x1b6   :  { %v68_v30 = vstv %s132_s0 }
 0x1b7   :  { %v69_v31 = vsub.f32 %v67_v29, %v68_v30 }
 0x1b9   :  { %v70_v32 = vsel %vm24_vm0, %v69_v31, -inf }
 0x1ba   :  { %v71_v33 = vmul.f32 1.442695, %v70_v32 }
 0x1bc   :  { %145 = vpow2.f32 %v71_v33 }
 0x1c9   :  { %v146_v34 = vpop.eup %145 }
 0x1ca   :  { %104 = vst [vmem:[%s238_s4] sm:$0x1] %v146_v34  ;;  %v73_v35 = vsel %vm54_vm3, %v146_v34, 0.0  ;;  %v83_v36 = vmul.f32 %v146_v34, %v20_v0 }
 0x1cb   :  { %74 = vadd.xlane.f32.xlu0 %v73_v35 }
 0x1cc   :  { %v84_v37 = vsel %vm54_vm3, %v83_v36, 0.0 }
 0x1cd   :  { %85 = vadd.xlane.f32.xlu1 %v84_v37 }
 0x254   :  { %v75_v38 = vpop.xlane.xlu0 %74 }
 0x255   :  { %v76_v39 = vrot.slane %v75_v38, 4 }
 0x256   :  { %v86_v40 = vpop.xlane.xlu1 %85 }
 0x257   :  { %v77_v41 = vadd.f32 %v76_v39, %v75_v38  ;;  %v87_v42 = vrot.slane %v86_v40, 4 }
 0x259   :  { %v78_v43 = vrot.slane %v77_v41, 2  ;;  %v88_v44 = vadd.f32 %v87_v42, %v86_v40 }
 0x25b   :  { %v79_v45 = vadd.f32 %v78_v43, %v77_v41  ;;  %v89_v46 = vrot.slane %v88_v44, 2 }
 0x25d   :  { %v90_v47 = vadd.f32 %v89_v46, %v88_v44  ;;  %v80_v48 = vrot.slane %v79_v45, 1 }
 0x25f   :  { %v81_v49 = vadd.f32 %v80_v48, %v79_v45  ;;  %v91_v50 = vrot.slane %v90_v47, 1 }
 0x261   :  { %133 = vpush %v81_v49  ;;  %v92_v51 = vadd.f32 %v91_v50, %v90_v47 }
 0x263   :  { %135 = vpush %v92_v51 }
 0x292   :  { %s134_s4 = spop %133 }
 0x293   :  { %s95_s30 = sadd.f32 1e-08, %s134_s4 }
 0x294   :  { %s136_s6 = spop %135 }
 0x295   :  { %v96_v52 = vstv %s95_s30  ;;  %v94_v54 = vstv %s136_s6 }
 0x296   :  { %147 = vrcp.f32 %v96_v52 }
 0x2a3   :  { %v148_v53 = vpop.eup %147 }
 0x2a4   :  { %137 = vpush %v148_v53 }
 0x2d5   :  { %s138_s7 = spop %137 }
 0x2d6   :  { %s99_s8 = smul.f32 4.0, %s138_s7 }
 0x2d8   :  { %v100_v55 = vstv %s99_s8 }
 0x2d9   :  { %v101_v56 = vmul.f32 %v100_v55, %v94_v54 }
 0x2db   :  { %103 = vst.msk [vmem:[#allocation3] sm:$0x1] %vm102_vm4, %v101_v56 }
 0x2dc PF:  { %s172_s9 = smov [#allocation3]  }
 0x2dd   :  { %s111_s10 = sshll.u32 %s172_s9, 4  ;;  %s112_s10 = int_to_ptr.vmem [resolvable:$true] %s111_s10 }
 0x2de   :  { %s149_s11 = scalar_lea.vmem %s112_s10, 16  ;;  %s153_s12 = scalar_lea.vmem %s112_s10, 32 }
 0x2df   :  { %p150_p2 = scmp.ne.s32.totalorder %s112_s10, %s149_s11  ;;  %p154_p3 = scmp.lt.s32.totalorder %s112_s10, %s112_s10 }
 0x2e0   :  { %p155_p4 = scmp.lt.s32.totalorder %s153_s12, %s149_s11 }
 0x2e2   :  { %p156_p5 = por %p155_p4, %p154_p3 }
 0x2e4   :  { %p157_p6 = pnand %p156_p5, %p150_p2 }
 0x2e6   :  { %160 = shalt.err (!%p157_p6)
}
 0x2e7   :  { %114 = dma.vmem_to_hbm [thread:$0]  %s112_s10, 16, %s237_s3, [#allocation4]  }
 0x2e8   :  { %169 = dma.done.wait [#allocation4], 16  }
 0x2e9   :  { %170 = vsyncadd [#allocation4], 4294967280 }
 0x2ea   :  { %126 = vsyncpa [#allocation4], 1 }

</bundles_post_ra>
